<compile_context>
chip_gen: v7x
topology: tpu7x:2x2x1
jax: 0.10.0
libtpu: 0.0.40
codegen_flags: <defaults>
</compile_context>

<pallas_src>
import math

import jax
import jax.numpy as jnp
from jax.experimental import pallas as pl
from jax.experimental.pallas import tpu as pltpu

_PI = math.pi
_HALF_PI = math.pi / 2.0
_TWO_PI = 2.0 * math.pi
# cv2 fastAtan2 polynomial coefficients (radian form) and DBL_EPSILON, as cv2 uses.
_P1 = 0.9997878412794807
_P3 = -0.3258083974640975
_P5 = 0.1555786518463281
_P7 = -0.04432655554792128
_EPS = 2.220446049250313e-16


# --------------------------------------------------------------------------- #
# Kernel
# --------------------------------------------------------------------------- #
def _gradient_kernel(x_ref, above_ref, below_ref, val_ref, ang_ref, xpad_ref):
    h = pl.program_id(1)
    nh = pl.num_programs(1)
    TH = x_ref.shape[2]
    W = x_ref.shape[3]
    C = val_ref.shape[1]
    hb = above_ref.shape[2]

    # ---- Build the BORDER_REFLECT_101 padded tile in VMEM (no HBM pad pass). ----
    xpad_ref[1:TH + 1, 1:W + 1] = x_ref[0, 0, :, :]

    # Row just above the tile: last row of the clamped halo block, or the
    # reflected row 1 of this tile when we sit at the top of the image.
    xpad_ref[0:1, 1:W + 1] = above_ref[0, 0, hb - 1:hb, :]

    @pl.when(h == 0)
    def _():
        xpad_ref[0:1, 1:W + 1] = x_ref[0, 0, 1:2, :]

    # Row just below the tile: first row of the clamped halo block, or the
    # reflected row TH-2 of this tile at the bottom of the image.
    xpad_ref[TH + 1:TH + 2, 1:W + 1] = below_ref[0, 0, 0:1, :]

    @pl.when(h == nh - 1)
    def _():
        xpad_ref[TH + 1:TH + 2, 1:W + 1] = x_ref[0, 0, TH - 2:TH - 1, :]

    # Reflected columns (corners included; rows were written first).
    xpad_ref[:, 0:1] = xpad_ref[:, 2:3]
    xpad_ref[:, W + 1:W + 2] = xpad_ref[:, W - 1:W]

    xpad = xpad_ref[...]                                   # (TH+2, W+2)

    # ---- Separable Scharr correlation (matches cv2.Sobel(ksize=-1)). ----
    # gx = horizontal [-1,0,1] of vertical smooth [3,10,3]
    sv = 3.0 * (xpad[0:TH, :] + xpad[2:TH + 2, :]) + 10.0 * xpad[1:TH + 1, :]
    gx = sv[:, 2:W + 2] - sv[:, 0:W]
    # gy = vertical [-1,0,1] of horizontal smooth [3,10,3]
    sh = 3.0 * (xpad[:, 0:W] + xpad[:, 2:W + 2]) + 10.0 * xpad[:, 1:W + 1]
    gy = sh[2:TH + 2, :] - sh[0:TH, :]

    # ---- cv2.cartToPolar: magnitude + fastAtan2 (radians, [0, 2*pi)). ----
    mag = jnp.sqrt(gx * gx + gy * gy)
    ax = jnp.abs(gx)
    ay = jnp.abs(gy)
    mx = jnp.maximum(ax, ay)
    mn = jnp.minimum(ax, ay)
    # one EUP reciprocal instead of the two divides of the naive formulation
    c = mn * pl.reciprocal(mx + _EPS, approx=True)
    c2 = c * c
    ang = (((_P7 * c2 + _P5) * c2 + _P3) * c2 + _P1) * c
    ang = jnp.where(ax >= ay, ang, _HALF_PI - ang)
    ang = jnp.where(gx < 0.0, _PI - ang, ang)
    ang = jnp.where(gy < 0.0, _TWO_PI - ang, ang)

    val_ref[0, 0, :, :] = mag
    ang_ref[0, 0, :, :] = ang
    if C > 1:                                    # static: zero channels in-kernel
        zeros2d = jnp.zeros((TH, W), val_ref.dtype)
        for ch in range(1, C):
            val_ref[0, ch, :, :] = zeros2d
            ang_ref[0, ch, :, :] = zeros2d


# --------------------------------------------------------------------------- #
# Wrapper (tiling / VMEM budgeting / pallas_call)
# --------------------------------------------------------------------------- #
def _vmem_budget_bytes():
    """Conservative scoped-VMEM budget for tiling, re-derived per chip."""
    try:
        cap = int(pltpu.get_tpu_info().vmem_capacity_bytes)
        if cap > 0:
            return max(cap * 3 // 8, 8 << 20)
    except Exception:
        pass
    return 24 << 20   # safe even on v7x's 64 MiB physical VMEM


def _pick_tile_rows(H, W, C, budget_bytes):
    """Largest multiple-of-8 divisor of H whose tile (plus ~live temporaries and
    double-buffered in/out blocks) fits the VMEM budget."""
    bytes_per_row = (20 + 4 * C) * W * 4
    max_rows = max(budget_bytes // max(bytes_per_row, 1), 8)
    if H <= max_rows or H % 8 != 0:
        return H
    th = (min(H, max_rows) // 8) * 8
    while th >= 8:
        if H % th == 0:
            return th
        th -= 8
    return H


def gradient_layer(x):
    """Pallas TPU port of GradientLayer.forward.

    x: (N, C, H, W). Gradients are computed on channel 0 only (the PyTorch
    module leaves the other channels zero). Returns (value, angle), both
    (N, C, H, W) float32: gradient magnitude and angle in radians [0, 2*pi).
    """
    N, C, H, W = x.shape
    x = x.astype(jnp.float32)

    budget = _vmem_budget_bytes()
    TH = _pick_tile_rows(H, W, C, budget)     # tile rows (divides H)
    HT = H // TH                              # number of row tiles
    HB = 8 if H % 8 == 0 else H               # halo-block height
    R = TH // HB                              # halo blocks per tile
    NB = H // HB                              # halo blocks in the image

    in_specs = [
        # channel-0 rows of this tile
        pl.BlockSpec((1, 1, TH, W), lambda n, h: (n, 0, h, 0)),
        # HB-row block containing the row just above the tile (clamped at top)
        pl.BlockSpec((1, 1, HB, W),
                     lambda n, h: (n, 0, jnp.maximum(h * R - 1, 0), 0)),
        # HB-row block containing the row just below the tile (clamped at bottom)
        pl.BlockSpec((1, 1, HB, W),
                     lambda n, h: (n, 0, jnp.minimum((h + 1) * R, NB - 1), 0)),
    ]
    out_spec = pl.BlockSpec((1, C, TH, W), lambda n, h: (n, 0, h, 0))
    out_sds = jax.ShapeDtypeStruct((N, C, H, W), jnp.float32)

    value, angle = pl.pallas_call(
        _gradient_kernel,
        out_shape=(out_sds, out_sds),
        grid_spec=pltpu.PrefetchScalarGridSpec(
            num_scalar_prefetch=0,
            grid=(N, HT),
            in_specs=in_specs,
            out_specs=[out_spec, out_spec],
            scratch_shapes=[pltpu.VMEM((TH + 2, W + 2), jnp.float32)],
        ),
        compiler_params=pltpu.CompilerParams(
            dimension_semantics=("parallel", "parallel"),
            vmem_limit_bytes=int(min(2 * budget, 112 << 20)),
        ),
    )(x, x, x)
    return value, angle


# --------------------------------------------------------------------------- #
# Pure-JAX reference (direct 3x3 taps, exact divides) and self-test
# --------------------------------------------------------------------------- #
def _scharr_ref(x0):
    """Direct 3x3 Scharr taps on reflect-padded (N, H, W) images."""
    _, H, W = x0.shape
    xp = jnp.pad(x0.astype(jnp.float32), ((0, 0), (1, 1), (1, 1)), mode="reflect")
    x00 = xp[:, 0:H, 0:W]
    x01 = xp[:, 0:H, 1:W + 1]
    x02 = xp[:, 0:H, 2:W + 2]
    x10 = xp[:, 1:H + 1, 0:W]
    x12 = xp[:, 1:H + 1, 2:W + 2]
    x20 = xp[:, 2:H + 2, 0:W]
    x21 = xp[:, 2:H + 2, 1:W + 1]
    x22 = xp[:, 2:H + 2, 2:W + 2]
    gx = 3.0 * (x02 - x00) + 10.0 * (x12 - x10) + 3.0 * (x22 - x20)
    gy = 3.0 * (x20 - x00) + 10.0 * (x21 - x01) + 3.0 * (x22 - x02)
    return gx, gy


def _fast_atan2_ref(y, x):
    ax = jnp.abs(x)
    ay = jnp.abs(y)
    c = jnp.minimum(ax, ay) / (jnp.maximum(ax, ay) + _EPS)
    c2 = c * c
    a = (((_P7 * c2 + _P5) * c2 + _P3) * c2 + _P1) * c
    a = jnp.where(ax >= ay, a, _HALF_PI - a)
    a = jnp.where(x < 0, _PI - a, a)
    a = jnp.where(y < 0, _TWO_PI - a, a)
    return a


def _reference(x):
    N, C, H, W = x.shape
    gx, gy = _scharr_ref(x[:, 0])
    value0 = jnp.sqrt(gx * gx + gy * gy)
    angle0 = _fast_atan2_ref(gy, gx)
    value = jnp.zeros((N, C, H, W), jnp.float32).at[:, 0].set(value0)
    angle = jnp.zeros((N, C, H, W), jnp.float32).at[:, 0].set(angle0)
    return value, angle


def _max_angle_err(a, b):
    """Wrap-aware max absolute angle difference (2*pi periodic)."""
    d = jnp.abs(a - b)
    return float(jnp.max(jnp.minimum(d, _TWO_PI - d)))


if __name__ == "__main__":
    key = jax.random.PRNGKey(0)
    N, C, H, W = 2, 4, 16, 16
    x = jax.random.normal(key, (N, C, H, W), dtype=jnp.float32)

    value, angle = jax.block_until_ready(gradient_layer(x))
    assert value.shape == (N, C, H, W) and angle.shape == (N, C, H, W)

    v_ref, a_ref = _reference(x)

    # channels 1.. are identically zero, as in the PyTorch module
    if C > 1:
        assert float(jnp.max(jnp.abs(value[:, 1:]))) == 0.0
        assert float(jnp.max(jnp.abs(angle[:, 1:]))) == 0.0

    # magnitude vs reference (separable vs direct taps: only f32 reassociation)
    assert jnp.allclose(value, v_ref, atol=1e-3, rtol=1e-4)

    # angle vs reference fastAtan2 (kernel uses approx reciprocal -> loose tol)
    assert _max_angle_err(angle[:, 0], a_ref[:, 0]) < 2e-2

    # angle vs exact atan2 (cv2's fastAtan2 is itself only ~0.3 deg accurate)
    gx, gy = _scharr_ref(x[:, 0])
    exact = jnp.arctan2(gy, gx)
    exact = jnp.where(exact < 0, exact + _TWO_PI, exact)
    assert _max_angle_err(angle[:, 0], exact) < 3e-2
    assert jnp.allclose(value[:, 0], jnp.sqrt(gx * gx + gy * gy),
                        atol=1e-3, rtol=1e-3)

    print("KERNEL_OK")
</pallas_src>

<mosaic_0001>
module attributes {stable_mosaic.version = 11 : i64} {
  func.func @_gradient_kernel(%arg0: i32, %arg1: i32, %arg2: memref<1x1x16x16xf32, #tpu.memory_space<vmem>>, %arg3: memref<1x1x8x16xf32, #tpu.memory_space<vmem>>, %arg4: memref<1x1x8x16xf32, #tpu.memory_space<vmem>>, %arg5: memref<1x4x16x16xf32, #tpu.memory_space<vmem>>, %arg6: memref<1x4x16x16xf32, #tpu.memory_space<vmem>>, %arg7: memref<18x18xf32, #tpu.memory_space<vmem>>) attributes {dimension_semantics = [#tpu.dimension_semantics<parallel>, #tpu.dimension_semantics<parallel>], iteration_bounds = array<i64: 2, 1>, scalar_prefetch = 0 : i64, scratch_operands = 1 : i64, tpu.core_type = #tpu.core_type<tc>, window_params = [{transform_indices = @transform_0, window_bounds = array<i64: 1, 1, 16, 16>}, {transform_indices = @transform_1, window_bounds = array<i64: 1, 1, 8, 16>}, {transform_indices = @transform_2, window_bounds = array<i64: 1, 1, 8, 16>}, {transform_indices = @transform_3, window_bounds = array<i64: 1, 4, 16, 16>}, {transform_indices = @transform_4, window_bounds = array<i64: 1, 4, 16, 16>}]} {
    %c0 = arith.constant 0 : index
    %c0_0 = arith.constant 0 : index
    %c0_1 = arith.constant 0 : index
    %c0_2 = arith.constant 0 : index
    %0 = vector.load %arg2[%c0, %c0_0, %c0_1, %c0_2] : memref<1x1x16x16xf32, #tpu.memory_space<vmem>>, vector<1x1x16x16xf32>
    %1 = vector.shape_cast %0 : vector<1x1x16x16xf32> to vector<16x16xf32>
    %c1 = arith.constant 1 : index
    %c1_3 = arith.constant 1 : index
    %2 = vector.load %arg7[%c1, %c1_3] : memref<18x18xf32, #tpu.memory_space<vmem>>, vector<16x16xf32>
    tpu.vector_store %arg7[%c1, %c1_3], %1 {strides = array<i32>} : memref<18x18xf32, #tpu.memory_space<vmem>>, vector<16x16xf32>,
    %c0_4 = arith.constant 0 : index
    %c0_5 = arith.constant 0 : index
    %c7 = arith.constant 7 : index
    %c0_6 = arith.constant 0 : index
    %3 = vector.load %arg3[%c0_4, %c0_5, %c7, %c0_6] : memref<1x1x8x16xf32, #tpu.memory_space<vmem>>, vector<1x1x1x16xf32>
    %4 = vector.shape_cast %3 : vector<1x1x1x16xf32> to vector<1x16xf32>
    %c0_7 = arith.constant 0 : index
    %c1_8 = arith.constant 1 : index
    %5 = vector.load %arg7[%c0_7, %c1_8] : memref<18x18xf32, #tpu.memory_space<vmem>>, vector<1x16xf32>
    tpu.vector_store %arg7[%c0_7, %c1_8], %4 {strides = array<i32>} : memref<18x18xf32, #tpu.memory_space<vmem>>, vector<1x16xf32>,
    %c0_i32 = arith.constant 0 : i32
    %6 = arith.cmpi eq, %arg1, %c0_i32 : i32
    %7 = arith.extui %6 : i1 to i32
    %c0_i32_9 = arith.constant 0 : i32
    %8 = arith.cmpi ne, %7, %c0_i32_9 : i32
    scf.if %8 {
      %c0_70 = arith.constant 0 : index
      %c0_71 = arith.constant 0 : index
      %c1_72 = arith.constant 1 : index
      %c0_73 = arith.constant 0 : index
      %107 = vector.load %arg2[%c0_70, %c0_71, %c1_72, %c0_73] : memref<1x1x16x16xf32, #tpu.memory_space<vmem>>, vector<1x1x1x16xf32>
      %108 = vector.shape_cast %107 : vector<1x1x1x16xf32> to vector<1x16xf32>
      %c0_74 = arith.constant 0 : index
      %c1_75 = arith.constant 1 : index
      %109 = vector.load %arg7[%c0_74, %c1_75] : memref<18x18xf32, #tpu.memory_space<vmem>>, vector<1x16xf32>
      tpu.vector_store %arg7[%c0_74, %c1_75], %108 {strides = array<i32>} : memref<18x18xf32, #tpu.memory_space<vmem>>, vector<1x16xf32>,
    } else {
    }
    %c0_10 = arith.constant 0 : index
    %c0_11 = arith.constant 0 : index
    %c0_12 = arith.constant 0 : index
    %c0_13 = arith.constant 0 : index
    %9 = vector.load %arg4[%c0_10, %c0_11, %c0_12, %c0_13] : memref<1x1x8x16xf32, #tpu.memory_space<vmem>>, vector<1x1x1x16xf32>
    %10 = vector.shape_cast %9 : vector<1x1x1x16xf32> to vector<1x16xf32>
    %c17 = arith.constant 17 : index
    %c1_14 = arith.constant 1 : index
    %11 = vector.load %arg7[%c17, %c1_14] : memref<18x18xf32, #tpu.memory_space<vmem>>, vector<1x16xf32>
    tpu.vector_store %arg7[%c17, %c1_14], %10 {strides = array<i32>} : memref<18x18xf32, #tpu.memory_space<vmem>>, vector<1x16xf32>,
    %c0_i32_15 = arith.constant 0 : i32
    %12 = arith.cmpi eq, %arg1, %c0_i32_15 : i32
    %13 = arith.extui %12 : i1 to i32
    %c0_i32_16 = arith.constant 0 : i32
    %14 = arith.cmpi ne, %13, %c0_i32_16 : i32
    scf.if %14 {
      %c0_70 = arith.constant 0 : index
      %c0_71 = arith.constant 0 : index
      %c14 = arith.constant 14 : index
      %c0_72 = arith.constant 0 : index
      %107 = vector.load %arg2[%c0_70, %c0_71, %c14, %c0_72] : memref<1x1x16x16xf32, #tpu.memory_space<vmem>>, vector<1x1x1x16xf32>
      %108 = vector.shape_cast %107 : vector<1x1x1x16xf32> to vector<1x16xf32>
      %c17_73 = arith.constant 17 : index
      %c1_74 = arith.constant 1 : index
      %109 = vector.load %arg7[%c17_73, %c1_74] : memref<18x18xf32, #tpu.memory_space<vmem>>, vector<1x16xf32>
      tpu.vector_store %arg7[%c17_73, %c1_74], %108 {strides = array<i32>} : memref<18x18xf32, #tpu.memory_space<vmem>>, vector<1x16xf32>,
    } else {
    }
    %c0_17 = arith.constant 0 : index
    %c2 = arith.constant 2 : index
    %15 = vector.load %arg7[%c0_17, %c2] : memref<18x18xf32, #tpu.memory_space<vmem>>, vector<18x1xf32>
    %c0_18 = arith.constant 0 : index
    %c0_19 = arith.constant 0 : index
    %16 = vector.load %arg7[%c0_18, %c0_19] : memref<18x18xf32, #tpu.memory_space<vmem>>, vector<18x1xf32>
    tpu.vector_store %arg7[%c0_18, %c0_19], %15 {strides = array<i32>} : memref<18x18xf32, #tpu.memory_space<vmem>>, vector<18x1xf32>,
    %c0_20 = arith.constant 0 : index
    %c15 = arith.constant 15 : index
    %17 = vector.load %arg7[%c0_20, %c15] : memref<18x18xf32, #tpu.memory_space<vmem>>, vector<18x1xf32>
    %c0_21 = arith.constant 0 : index
    %c17_22 = arith.constant 17 : index
    %18 = vector.load %arg7[%c0_21, %c17_22] : memref<18x18xf32, #tpu.memory_space<vmem>>, vector<18x1xf32>
    tpu.vector_store %arg7[%c0_21, %c17_22], %17 {strides = array<i32>} : memref<18x18xf32, #tpu.memory_space<vmem>>, vector<18x1xf32>,
    %c0_23 = arith.constant 0 : index
    %c0_24 = arith.constant 0 : index
    %19 = vector.load %arg7[%c0_23, %c0_24] : memref<18x18xf32, #tpu.memory_space<vmem>>, vector<18x18xf32>
    %20 = vector.extract_strided_slice %19 {offsets = [0, 0], sizes = [16, 18], strides = [1, 1]} : vector<18x18xf32> to vector<16x18xf32>
    %21 = vector.extract_strided_slice %19 {offsets = [2, 0], sizes = [16, 18], strides = [1, 1]} : vector<18x18xf32> to vector<16x18xf32>
    %22 = arith.addf %20, %21 : vector<16x18xf32>
    %cst = arith.constant 3.000000e+00 : f32
    %23 = vector.broadcast %cst : f32 to vector<16x18xf32>
    %24 = arith.mulf %23, %22 : vector<16x18xf32>
    %25 = vector.extract_strided_slice %19 {offsets = [1, 0], sizes = [16, 18], strides = [1, 1]} : vector<18x18xf32> to vector<16x18xf32>
    %cst_25 = arith.constant 1.000000e+01 : f32
    %26 = vector.broadcast %cst_25 : f32 to vector<16x18xf32>
    %27 = arith.mulf %26, %25 : vector<16x18xf32>
    %28 = arith.addf %24, %27 : vector<16x18xf32>
    %29 = vector.extract_strided_slice %28 {offsets = [0, 2], sizes = [16, 16], strides = [1, 1]} : vector<16x18xf32> to vector<16x16xf32>
    %30 = vector.extract_strided_slice %28 {offsets = [0, 0], sizes = [16, 16], strides = [1, 1]} : vector<16x18xf32> to vector<16x16xf32>
    %31 = arith.subf %29, %30 : vector<16x16xf32>
    %32 = vector.extract_strided_slice %19 {offsets = [0, 0], sizes = [18, 16], strides = [1, 1]} : vector<18x18xf32> to vector<18x16xf32>
    %33 = vector.extract_strided_slice %19 {offsets = [0, 2], sizes = [18, 16], strides = [1, 1]} : vector<18x18xf32> to vector<18x16xf32>
    %34 = arith.addf %32, %33 : vector<18x16xf32>
    %cst_26 = arith.constant 3.000000e+00 : f32
    %35 = vector.broadcast %cst_26 : f32 to vector<18x16xf32>
    %36 = arith.mulf %35, %34 : vector<18x16xf32>
    %37 = vector.extract_strided_slice %19 {offsets = [0, 1], sizes = [18, 16], strides = [1, 1]} : vector<18x18xf32> to vector<18x16xf32>
    %cst_27 = arith.constant 1.000000e+01 : f32
    %38 = vector.broadcast %cst_27 : f32 to vector<18x16xf32>
    %39 = arith.mulf %38, %37 : vector<18x16xf32>
    %40 = arith.addf %36, %39 : vector<18x16xf32>
    %41 = vector.extract_strided_slice %40 {offsets = [2, 0], sizes = [16, 16], strides = [1, 1]} : vector<18x16xf32> to vector<16x16xf32>
    %42 = vector.extract_strided_slice %40 {offsets = [0, 0], sizes = [16, 16], strides = [1, 1]} : vector<18x16xf32> to vector<16x16xf32>
    %43 = arith.subf %41, %42 : vector<16x16xf32>
    %44 = arith.mulf %31, %31 : vector<16x16xf32>
    %45 = arith.mulf %43, %43 : vector<16x16xf32>
    %46 = arith.addf %44, %45 : vector<16x16xf32>
    %47 = math.sqrt %46 : vector<16x16xf32>
    %48 = math.absf %31 : vector<16x16xf32>
    %49 = math.absf %43 : vector<16x16xf32>
    %50 = arith.maximumf %48, %49 : vector<16x16xf32>
    %51 = arith.minimumf %48, %49 : vector<16x16xf32>
    %cst_28 = arith.constant 2.22044605E-16 : f32
    %52 = vector.broadcast %cst_28 : f32 to vector<16x16xf32>
    %53 = arith.addf %50, %52 : vector<16x16xf32>
    %54 = tpu.reciprocal %53 {approx = true} : vector<16x16xf32> -> vector<16x16xf32>
    %55 = arith.mulf %51, %54 : vector<16x16xf32>
    %56 = arith.mulf %55, %55 : vector<16x16xf32>
    %cst_29 = arith.constant -0.044326555 : f32
    %57 = vector.broadcast %cst_29 : f32 to vector<16x16xf32>
    %58 = arith.mulf %57, %56 : vector<16x16xf32>
    %cst_30 = arith.constant 0.155578658 : f32
    %59 = vector.broadcast %cst_30 : f32 to vector<16x16xf32>
    %60 = arith.addf %58, %59 : vector<16x16xf32>
    %61 = arith.mulf %60, %56 : vector<16x16xf32>
    %cst_31 = arith.constant -0.325808406 : f32
    %62 = vector.broadcast %cst_31 : f32 to vector<16x16xf32>
    %63 = arith.addf %61, %62 : vector<16x16xf32>
    %64 = arith.mulf %63, %56 : vector<16x16xf32>
    %cst_32 = arith.constant 0.999787867 : f32
    %65 = vector.broadcast %cst_32 : f32 to vector<16x16xf32>
    %66 = arith.addf %64, %65 : vector<16x16xf32>
    %67 = arith.mulf %66, %55 : vector<16x16xf32>
    %68 = arith.cmpf oge, %48, %49 : vector<16x16xf32>
    %cst_33 = arith.constant 1.57079637 : f32
    %69 = vector.broadcast %cst_33 : f32 to vector<16x16xf32>
    %70 = arith.subf %69, %67 : vector<16x16xf32>
    %71 = arith.select %68, %67, %70 : vector<16x16xi1>, vector<16x16xf32>
    %cst_34 = arith.constant 0.000000e+00 : f32
    %72 = vector.broadcast %cst_34 : f32 to vector<16x16xf32>
    %73 = arith.cmpf olt, %31, %72 : vector<16x16xf32>
    %cst_35 = arith.constant 3.14159274 : f32
    %74 = vector.broadcast %cst_35 : f32 to vector<16x16xf32>
    %75 = arith.subf %74, %71 : vector<16x16xf32>
    %76 = arith.select %73, %75, %71 : vector<16x16xi1>, vector<16x16xf32>
    %cst_36 = arith.constant 0.000000e+00 : f32
    %77 = vector.broadcast %cst_36 : f32 to vector<16x16xf32>
    %78 = arith.cmpf olt, %43, %77 : vector<16x16xf32>
    %cst_37 = arith.constant 6.28318548 : f32
    %79 = vector.broadcast %cst_37 : f32 to vector<16x16xf32>
    %80 = arith.subf %79, %76 : vector<16x16xf32>
    %81 = arith.select %78, %80, %76 : vector<16x16xi1>, vector<16x16xf32>
    %c0_38 = arith.constant 0 : index
    %c0_39 = arith.constant 0 : index
    %c0_40 = arith.constant 0 : index
    %c0_41 = arith.constant 0 : index
    %82 = vector.load %arg5[%c0_38, %c0_39, %c0_40, %c0_41] : memref<1x4x16x16xf32, #tpu.memory_space<vmem>>, vector<1x1x16x16xf32>
    %83 = vector.shape_cast %82 : vector<1x1x16x16xf32> to vector<16x16xf32>
    %84 = vector.shape_cast %47 : vector<16x16xf32> to vector<1x1x16x16xf32>
    tpu.vector_store %arg5[%c0_38, %c0_39, %c0_40, %c0_41], %84 {strides = array<i32>} : memref<1x4x16x16xf32, #tpu.memory_space<vmem>>, vector<1x1x16x16xf32>,
    %c0_42 = arith.constant 0 : index
    %c0_43 = arith.constant 0 : index
    %c0_44 = arith.constant 0 : index
    %c0_45 = arith.constant 0 : index
    %85 = vector.load %arg6[%c0_42, %c0_43, %c0_44, %c0_45] : memref<1x4x16x16xf32, #tpu.memory_space<vmem>>, vector<1x1x16x16xf32>
    %86 = vector.shape_cast %85 : vector<1x1x16x16xf32> to vector<16x16xf32>
    %87 = vector.shape_cast %81 : vector<16x16xf32> to vector<1x1x16x16xf32>
    tpu.vector_store %arg6[%c0_42, %c0_43, %c0_44, %c0_45], %87 {strides = array<i32>} : memref<1x4x16x16xf32, #tpu.memory_space<vmem>>, vector<1x1x16x16xf32>,
    %cst_46 = arith.constant 0.000000e+00 : f32
    %88 = vector.broadcast %cst_46 : f32 to vector<16x16xf32>
    %c0_47 = arith.constant 0 : index
    %c1_48 = arith.constant 1 : index
    %c0_49 = arith.constant 0 : index
    %c0_50 = arith.constant 0 : index
    %89 = vector.load %arg5[%c0_47, %c1_48, %c0_49, %c0_50] : memref<1x4x16x16xf32, #tpu.memory_space<vmem>>, vector<1x1x16x16xf32>
    %90 = vector.shape_cast %89 : vector<1x1x16x16xf32> to vector<16x16xf32>
    %91 = vector.shape_cast %88 : vector<16x16xf32> to vector<1x1x16x16xf32>
    tpu.vector_store %arg5[%c0_47, %c1_48, %c0_49, %c0_50], %91 {strides = array<i32>} : memref<1x4x16x16xf32, #tpu.memory_space<vmem>>, vector<1x1x16x16xf32>,
    %c0_51 = arith.constant 0 : index
    %c1_52 = arith.constant 1 : index
    %c0_53 = arith.constant 0 : index
    %c0_54 = arith.constant 0 : index
    %92 = vector.load %arg6[%c0_51, %c1_52, %c0_53, %c0_54] : memref<1x4x16x16xf32, #tpu.memory_space<vmem>>, vector<1x1x16x16xf32>
    %93 = vector.shape_cast %92 : vector<1x1x16x16xf32> to vector<16x16xf32>
    %94 = vector.shape_cast %88 : vector<16x16xf32> to vector<1x1x16x16xf32>
    tpu.vector_store %arg6[%c0_51, %c1_52, %c0_53, %c0_54], %94 {strides = array<i32>} : memref<1x4x16x16xf32, #tpu.memory_space<vmem>>, vector<1x1x16x16xf32>,
    %c0_55 = arith.constant 0 : index
    %c2_56 = arith.constant 2 : index
    %c0_57 = arith.constant 0 : index
    %c0_58 = arith.constant 0 : index
    %95 = vector.load %arg5[%c0_55, %c2_56, %c0_57, %c0_58] : memref<1x4x16x16xf32, #tpu.memory_space<vmem>>, vector<1x1x16x16xf32>
    %96 = vector.shape_cast %95 : vector<1x1x16x16xf32> to vector<16x16xf32>
    %97 = vector.shape_cast %88 : vector<16x16xf32> to vector<1x1x16x16xf32>
    tpu.vector_store %arg5[%c0_55, %c2_56, %c0_57, %c0_58], %97 {strides = array<i32>} : memref<1x4x16x16xf32, #tpu.memory_space<vmem>>, vector<1x1x16x16xf32>,
    %c0_59 = arith.constant 0 : index
    %c2_60 = arith.constant 2 : index
    %c0_61 = arith.constant 0 : index
    %c0_62 = arith.constant 0 : index
    %98 = vector.load %arg6[%c0_59, %c2_60, %c0_61, %c0_62] : memref<1x4x16x16xf32, #tpu.memory_space<vmem>>, vector<1x1x16x16xf32>
    %99 = vector.shape_cast %98 : vector<1x1x16x16xf32> to vector<16x16xf32>
    %100 = vector.shape_cast %88 : vector<16x16xf32> to vector<1x1x16x16xf32>
    tpu.vector_store %arg6[%c0_59, %c2_60, %c0_61, %c0_62], %100 {strides = array<i32>} : memref<1x4x16x16xf32, #tpu.memory_space<vmem>>, vector<1x1x16x16xf32>,
    %c0_63 = arith.constant 0 : index
    %c3 = arith.constant 3 : index
    %c0_64 = arith.constant 0 : index
    %c0_65 = arith.constant 0 : index
    %101 = vector.load %arg5[%c0_63, %c3, %c0_64, %c0_65] : memref<1x4x16x16xf32, #tpu.memory_space<vmem>>, vector<1x1x16x16xf32>
    %102 = vector.shape_cast %101 : vector<1x1x16x16xf32> to vector<16x16xf32>
    %103 = vector.shape_cast %88 : vector<16x16xf32> to vector<1x1x16x16xf32>
    tpu.vector_store %arg5[%c0_63, %c3, %c0_64, %c0_65], %103 {strides = array<i32>} : memref<1x4x16x16xf32, #tpu.memory_space<vmem>>, vector<1x1x16x16xf32>,
    %c0_66 = arith.constant 0 : index
    %c3_67 = arith.constant 3 : index
    %c0_68 = arith.constant 0 : index
    %c0_69 = arith.constant 0 : index
    %104 = vector.load %arg6[%c0_66, %c3_67, %c0_68, %c0_69] : memref<1x4x16x16xf32, #tpu.memory_space<vmem>>, vector<1x1x16x16xf32>
    %105 = vector.shape_cast %104 : vector<1x1x16x16xf32> to vector<16x16xf32>
    %106 = vector.shape_cast %88 : vector<16x16xf32> to vector<1x1x16x16xf32>
    tpu.vector_store %arg6[%c0_66, %c3_67, %c0_68, %c0_69], %106 {strides = array<i32>} : memref<1x4x16x16xf32, #tpu.memory_space<vmem>>, vector<1x1x16x16xf32>,
    return
  }
  func.func @transform_0(%arg0: i32, %arg1: i32) -> (i32, i32, i32, i32) {
    %c0_i32 = arith.constant 0 : i32
    %c0_i32_0 = arith.constant 0 : i32
    %c0_i32_1 = arith.constant 0 : i32
    return %arg0, %c0_i32, %arg1, %c0_i32_0 : i32, i32, i32, i32
  }
  func.func @transform_1(%arg0: i32, %arg1: i32) -> (i32, i32, i32, i32) {
    %c2_i32 = arith.constant 2 : i32
    %0 = arith.muli %arg1, %c2_i32 : i32
    %c1_i32 = arith.constant 1 : i32
    %1 = arith.subi %0, %c1_i32 : i32
    %c0_i32 = arith.constant 0 : i32
    %2 = arith.maxsi %1, %c0_i32 : i32
    %c0_i32_0 = arith.constant 0 : i32
    %c0_i32_1 = arith.constant 0 : i32
    %c0_i32_2 = arith.constant 0 : i32
    return %arg0, %c0_i32_0, %2, %c0_i32_1 : i32, i32, i32, i32
  }
  func.func @transform_2(%arg0: i32, %arg1: i32) -> (i32, i32, i32, i32) {
    %c1_i32 = arith.constant 1 : i32
    %0 = arith.addi %arg1, %c1_i32 : i32
    %c2_i32 = arith.constant 2 : i32
    %1 = arith.muli %0, %c2_i32 : i32
    %c1_i32_0 = arith.constant 1 : i32
    %2 = arith.minsi %1, %c1_i32_0 : i32
    %c0_i32 = arith.constant 0 : i32
    %c0_i32_1 = arith.constant 0 : i32
    %c0_i32_2 = arith.constant 0 : i32
    return %arg0, %c0_i32, %2, %c0_i32_1 : i32, i32, i32, i32
  }
  func.func @transform_3(%arg0: i32, %arg1: i32) -> (i32, i32, i32, i32) {
    %c0_i32 = arith.constant 0 : i32
    %c0_i32_0 = arith.constant 0 : i32
    %c0_i32_1 = arith.constant 0 : i32
    return %arg0, %c0_i32, %arg1, %c0_i32_0 : i32, i32, i32, i32
  }
  func.func @transform_4(%arg0: i32, %arg1: i32) -> (i32, i32, i32, i32) {
    %c0_i32 = arith.constant 0 : i32
    %c0_i32_0 = arith.constant 0 : i32
    %c0_i32_1 = arith.constant 0 : i32
    return %arg0, %c0_i32, %arg1, %c0_i32_0 : i32, i32, i32, i32
  }
}

</mosaic_0001>

<bundles_post_ra>
// kernel: tpu_custom_call.1
= control target key start
LH: loop header
LB: loop body
LE: loop exit
PB: predicated region body
PF: predicated region fallthrough
CT: control target
= control target key end

     0   :  { %s1689_s0 = inlined_call_operand.hbm [shape: f32[2,4,16,16], index: 0, kind: input, shape index: {}]   ;;  %s1690_s1 = inlined_call_operand.hbm [shape: f32[2,4,16,16], index: 1, kind: input, shape index: {}]   ;;  %s1691_s2 = inlined_call_operand.hbm [shape: f32[2,4,16,16], index: 2, kind: input, shape index: {}]   ;;  %s1692_s3 = inlined_call_operand.hbm [shape: f32[2,4,16,16], index: 3, kind: output, shape index: {0}]   ;;  %s1693_s4 = inlined_call_operand.hbm [shape: f32[2,4,16,16], index: 4, kind: output, shape index: {1}]  }
   0x1   :  { %1701 = sst [smem:[#allocation20_spill]] %s1689_s0 }
   0x2   :  { %1702 = sst [smem:[#allocation21_spill]] %s1690_s1 }
   0x3   :  { %10 = vsyncpa [#allocation4], 0 }
   0x4   :  { %12 = vsyncpa [#allocation4 + $0x1], 0 }
   0x5   :  { %13 = vsyncpa [#allocation7], 0 }
   0x6   :  { %15 = vsyncpa [#allocation7 + $0x1], 0 }
   0x7   :  { %16 = vsyncpa [#allocation5], 0 }
   0x8   :  { %18 = vsyncpa [#allocation5 + $0x1], 0 }
   0x9   :  { %19 = vsyncpa [#allocation11], 0 }
   0xa   :  { %21 = vsyncpa [#allocation11 + $0x1], 0  ;;  %s1288_s15 = smov 0   ;;  %s1290_s16 = smov 0  }
   0xb   :  { %s1292_s17 = smov 0   ;;  %s1294_s18 = smov 0  }
   0xc   :  { %s1296_s19 = smov 0   ;;  %s1298_s20 = smov 0  }
   0xd LB: > { %1703 = sst [smem:[#allocation16_spill]] %s1235_s17  ;;  %s1319_s21 = sadd.s32 4294967295, %s1247_s20   ;;  %s1247_s20 = sphi %s1298_s20, %s27_s20   ;;  %s1243_s19 = sphi %s1296_s19, %s1726_s19   ;;  %s1239_s18 = sphi %s1294_s18, %s1725_s18   ;;  %s1235_s17 = sphi %s1292_s17, %s1724_s17   ;;  %s1231_s16 = sphi %s1290_s16, %s1728_s16   ;;  %s1227_s15 = sphi %s1288_s15, %s1727_s15  }
   0xe   : > { %1704 = sst [smem:[#allocation17_spill]] %s1243_s19  ;;  %s900_s22 = sadd.s32 4294967294, %s1247_s20  }
   0xf   : > { %s39_s23 = sadd.s32 1, %s1243_s19  ;;  %s48_s24 = sadd.s32 1, %s1235_s17 }
  0x10   : > { %p41_p0 = scmp.ge.s32.totalorder %s39_s23, 2  ;;  %p55_p1 = scmp.ne.s32.totalorder %s1235_s17, %s1231_s16 }
  0x11   : > { %p56_p2 = scmp.eq.s32.totalorder %s1247_s20, 0  ;;  %p61_p3 = scmp.ne.s32.totalorder %s1231_s16, %s1227_s15 }
  0x12   : > { %s1730_s23 = smov (%p41_p0, %s39_s23), 0  ;;  %p62_p5 = scmp.eq.s32.totalorder %s1319_s21, 0 }
  0x13   : > { %1705 = sst [smem:[#allocation18_spill]] %s1730_s23  ;;  %p1331_p4 = por %p56_p2, %p55_p1 }
  0x14   : > { %s43_s26 = ssub.s32 %s1243_s19, %s1730_s23  ;;  %p159_p6 = scmp.eq.s32.totalorder %s1319_s21, 1 }
  0x15   : > { %p46_p7 = scmp.eq.s32.totalorder %s43_s26, 0  ;;  %p1339_p8 = por %p62_p5, %p61_p3 }
  0x16   : > { %p1343_p9 = por %p159_p6, %p55_p1  ;;  %p165_p10 = scmp.eq.s32.totalorder %s900_s22, 1 }
  0x17   : > { %s1707_s27 = scalar_select %p1339_p8, 1, 0 }
  0x18   : > { %s1708_s28 = scalar_select %p1343_p9, 1, 0 }
  0x19   : > { %s1348_s29 = scalar_select %p46_p7, %s1235_s17, %s48_s24  }
  0x1a   : > { %p1350_p11 = por %p165_p10, %p61_p3  ;;  %p972_p13 = scmp.lt.s32.totalorder %s1247_s20, 2 }
  0x1b   : > { %1709 = sst [smem:[#allocation19_spill]] %s1348_s29  ;;  %s1357_s5 = sand.u32 1, %s1235_s17  }
  0x1c   : > { %s1710_s30 = scalar_select %p1350_p11, 1, 0 }
  0x1d   : > { %s1360_s6 = sshll.u32 %s1243_s19, 10  ;;  %s236_s7 = sand.u32 1, %s1247_s20  }
  0x1e   : > { %s1711_s0 = sld [smem:[#allocation20_spill]]  ;;  %p1371_p0 = pnand %p972_p13, %p1331_p4 }
  0x1f   : > { %s1694_s12 = sshll.u32 %s1357_s5, 3  ;;  %s1713_s1 = sld [smem:[#allocation21_spill]] }
  0x20   : > { %s1712_s11 = scalar_select %p1371_p0, 1, 0 }
  0x21   : > { %s240_s24 = scalar_lea.vmem [#allocation6], %s1694_s12  ;;  %s1386_s25 = scalar_lea.sflag [#allocation7], %s236_s7 }
  0x22   : > { %s253_s26 = sshll.u32 %s240_s24, 4  ;;  %p1392_p2 = pneg %p1371_p0  ;;  %s1384_s26 = int_to_ptr.vmem [resolvable:$true] %s253_s26 }
  0x24   : > { %s1367_s10 = scalar_lea.hbm %s1711_s0, %s1360_s6 }
  0x25   : > { %s1380_s22 = scalar_lea.hbm %s1713_s1, %s1360_s6  ;;  %s1044_s12 = scalar_lea.hbm %s1713_s1, 2048 }
  0x26   : > { %s1039_s8 = scalar_lea.hbm %s1380_s22, 128  ;;  %p1045_p5 = scmp.lt.u32.totalorder %s1380_s22, %s1713_s1 }
  0x27   : > { %p1040_p1 = scmp.ne.s32.totalorder %s1380_s22, %s1039_s8  ;;  %p1046_p6 = scmp.lt.u32.totalorder %s1044_s12, %s1039_s8 }
  0x28   : > { %p1048_p10 = scmp.lt.u32.totalorder %s1039_s8, %s1380_s22 }
  0x29   : > { %p1042_p3 = pnand %p1392_p2, %p1040_p1  ;;  %p1047_p7 = por %p1046_p6, %p1045_p5 }
  0x2b   : > { %p1043_p4 = pneg %p1042_p3  ;;  %p1049_p13 = por %p1048_p10, %p1047_p7 }
  0x2d   : > { %p1050_p12 = pnand %p1049_p13, %p1043_p4 }
  0x2f   : > { %1053 = shalt.err (!%p1050_p12)
}
  0x30   : > { %s1054_s7 = scalar_lea.vmem %s1384_s26, 128  ;;  %s1249_s13 = smov [#allocation6]  }
  0x31   : > { %p1055_p1 = scmp.ne.s32.totalorder %s1384_s26, %s1054_s7  ;;  %s1059_s14 = sshll.u32 %s1249_s13, 4  ;;  %s1060_s14 = int_to_ptr.vmem [resolvable:$false] %s1059_s14 }
  0x32   : > { %s1061_s23 = scalar_lea.vmem %s1060_s14, 256  ;;  %p1062_p9 = scmp.lt.s32.totalorder %s1384_s26, %s1060_s14 }
  0x33   : > { %p1057_p3 = pnand %p1055_p1, %p1392_p2  ;;  %p1063_p8 = scmp.lt.s32.totalorder %s1061_s23, %s1054_s7 }
  0x35   : > { %p1058_p11 = pneg %p1057_p3  ;;  %p1064_p5 = por %p1063_p8, %p1062_p9 }
  0x37   : > { %p1065_p6 = pnand %p1064_p5, %p1058_p11 }
  0x39   : > { %1068 = shalt.err (!%p1065_p6)
}
  0x3a   : > { %961 = dma.hbm_to_vmem [thread:$0]  (!%p1371_p0), %s1380_s22, 128, %s1384_s26, %s1386_s25  }
  0x3b   : > { %p912_p12 = scmp.ge.s32.totalorder %s1247_s20, 1  ;;  %p282_p4 = scmp.lt.s32.totalorder %s1247_s20, 3 }
  0x3c   : > { %s903_s8 = sshll.u32 %s1357_s5, 4  ;;  %s941_s13 = sadd.s32 128, %s1360_s6 }
  0x3d   : > { %p1418_p8 = pnand %p912_p12, %p282_p4  ;;  %s217_s24 = scalar_lea.vmem [#allocation3], %s903_s8 }
  0x3e   : > { %s226_s7 = sshll.u32 %s217_s24, 4  ;;  %s1429_s1 = scalar_lea.hbm %s1691_s2, %s941_s13  ;;  %s1424_s7 = int_to_ptr.vmem [resolvable:$true] %s226_s7 }
  0x3f   : > { %s1715_s12 = scalar_select %p1418_p8, 1, 0 }
  0x40   : > { %s214_s22 = scalar_lea.sflag [#allocation4], %s1357_s5  ;;  %s1069_s26 = scalar_lea.hbm %s1367_s10, 256 }
  0x41   : > { %p1070_p9 = scmp.ne.s32.totalorder %s1367_s10, %s1069_s26  ;;  %s1074_s17 = scalar_lea.hbm %s1711_s0, 2048 }
  0x42   : > { %p1075_p10 = scmp.lt.u32.totalorder %s1367_s10, %s1711_s0  ;;  %p1076_p13 = scmp.lt.u32.totalorder %s1074_s17, %s1069_s26 }
  0x43   : > { %p1072_p11 = pnand %p1070_p9, %p1392_p2  ;;  %p1078_p3 = scmp.lt.u32.totalorder %s1069_s26, %s1367_s10 }
  0x44   : > { %p1077_p1 = por %p1076_p13, %p1075_p10 }
  0x45   : > { %p1073_p7 = pneg %p1072_p11 }
  0x46   : > { %p1079_p5 = por %p1078_p3, %p1077_p1 }
  0x48   : > { %p1080_p6 = pnand %p1079_p5, %p1073_p7 }
  0x4a   : > { %1083 = shalt.err (!%p1080_p6)
}
  0x4b   : > { %s1084_s6 = scalar_lea.vmem %s1424_s7, 256  ;;  %s1250_s19 = smov [#allocation3]  }
  0x4c   : > { %p1085_p12 = scmp.ne.s32.totalorder %s1424_s7, %s1084_s6  ;;  %s1089_s29 = sshll.u32 %s1250_s19, 4  ;;  %s1090_s29 = int_to_ptr.vmem [resolvable:$false] %s1089_s29 }
  0x4d   : > { %s1091_s13 = scalar_lea.vmem %s1090_s29, 512  ;;  %p1092_p11 = scmp.lt.s32.totalorder %s1424_s7, %s1090_s29 }
  0x4e   : > { %p1087_p4 = pnand %p1085_p12, %p1392_p2  ;;  %p1093_p8 = scmp.lt.s32.totalorder %s1091_s13, %s1084_s6 }
  0x50   : > { %p1088_p9 = pneg %p1087_p4  ;;  %p1094_p10 = por %p1093_p8, %p1092_p11 }
  0x52   : > { %p1095_p13 = pnand %p1094_p10, %p1088_p9 }
  0x54   : > { %1098 = shalt.err (!%p1095_p13)
}
  0x55   : > { %s1251_s17 = smov 128   ;;  %s1252_s14 = smov 8  }
  0x56   : > { %958 = dma.hbm_to_vmem [thread:$0]  (!%p1371_p0), %s1367_s10, 256, %s1424_s7, %s214_s22, %s1251_s17, %s1251_s17, %s1252_s14  }
  0x57   : > { %s1716_s23 = sshll.u32 %s1357_s5, 3  ;;  %s1099_s24 = scalar_lea.hbm %s1429_s1, 128 }
  0x58   : > { %s264_s26 = scalar_lea.vmem [#allocation8], %s1716_s23  ;;  %p1100_p8 = scmp.ne.s32.totalorder %s1429_s1, %s1099_s24 }
  0x59   : > { %s277_s8 = sshll.u32 %s264_s26, 4  ;;  %s1104_s29 = scalar_lea.hbm %s1691_s2, 2048  ;;  %s278_s8 = int_to_ptr.vmem [resolvable:$true] %s277_s8 }
  0x5a   : > { %p1102_p7 = pnand %p1100_p8, %p1392_p2  ;;  %p1105_p3 = scmp.lt.u32.totalorder %s1429_s1, %s1691_s2 }
  0x5b   : > { %p1106_p5 = scmp.lt.u32.totalorder %s1104_s29, %s1099_s24  ;;  %p1108_p12 = scmp.lt.u32.totalorder %s1099_s24, %s1429_s1 }
  0x5c   : > { %p1103_p1 = pneg %p1102_p7 }
  0x5d   : > { %p1107_p6 = por %p1106_p5, %p1105_p3 }
  0x5f   : > { %p1109_p4 = por %p1108_p12, %p1107_p6 }
  0x61   : > { %p1110_p9 = pnand %p1109_p4, %p1103_p1 }
  0x63   : > { %1113 = shalt.err (!%p1110_p9)
}
  0x64   : > { %s1114_s5 = scalar_lea.vmem %s278_s8, 128  ;;  %s1253_s10 = smov [#allocation8]  }
  0x65   : > { %p1115_p11 = scmp.ne.s32.totalorder %s278_s8, %s1114_s5  ;;  %s1119_s7 = sshll.u32 %s1253_s10, 4  ;;  %s1120_s7 = int_to_ptr.vmem [resolvable:$false] %s1119_s7 }
  0x66   : > { %s1121_s22 = scalar_lea.vmem %s1120_s7, 256  ;;  %p1122_p8 = scmp.lt.s32.totalorder %s278_s8, %s1120_s7 }
  0x67   : > { %p1117_p10 = pnand %p1115_p11, %p1392_p2  ;;  %p1123_p7 = scmp.lt.s32.totalorder %s1121_s22, %s1114_s5 }
  0x69   : > { %p1118_p13 = pneg %p1117_p10  ;;  %p1124_p0 = por %p1123_p7, %p1122_p8 }
  0x6b   : > { %p1125_p3 = pnand %p1124_p0, %p1118_p13 }
  0x6d   : > { %1128 = shalt.err (!%p1125_p3)
}
  0x6e   : > { %p1717_p5 = scmp.ne.s32.totalorder %s1712_s11, 0  ;;  %p1718_p1 = scmp.ne.s32.totalorder %s1715_s12, 0 }
  0x6f   : > { %s1478_s0 = sand.u32 (!%p1718_p1), 1, %s1231_s16   ;;  %p1719_p2 = scmp.ne.s32.totalorder (!%p1718_p1), %s1707_s27, 0 }
  0x70   : > { %964 = dma.hbm_to_vmem [thread:$0]  (!%p1717_p5), %s1429_s1, 128, %s278_s8, %s1386_s25  }
  0x71   : > { %286 = sbr.rel (%p1718_p1) target bundleno = 955 (0x3bb), region = 32  ;;  %s913_s9 = sshll.u32 (!%p1718_p1), %s1478_s0, 4 }
  0x72   : > { %s289_s17 = scalar_lea.sflag (!%p1718_p1), [#allocation4], %s1478_s0  ;;  %s292_s14 = scalar_lea.vmem (!%p1718_p1), [#allocation3], %s913_s9 }
  0x78   : > { %1210 = dma.done.wait (%p1719_p2), %s289_s17, 256  }
  0x79   : > { %1212 = vsyncadd (%p1719_p2), %s289_s17, 4294967040  ;;  %s297_s1 = sand.u32 1, %s1319_s21   ;;  %s914_s11 = sshll.u32 %s1478_s0, 3 }
  0x7a   : > { %s298_s25 = scalar_lea.sflag [#allocation7], %s297_s1  ;;  %s301_s12 = scalar_lea.vmem [#allocation6], %s914_s11 }
  0x7b   : > { %1214 = dma.done.wait (%p1719_p2), %s298_s25, 256  }
  0x7c   : > { %1216 = vsyncadd (%p1719_p2), %s298_s25, 4294967040  ;;  %v374_v0 = vld [vmem:[%s301_s12 + $0x7] sm:$0x1]  ;;  %v362_v1 = vld [vmem:[%s292_s14 + $0x8] sm:$0xff]  ;;  %s1254_s23 = smov 1   ;;  %s310_s26 = scalar_lea.vmem [#allocation8], %s914_s11 }
  0x7d   : > { %376 = vrot.lane.b32.xlu0 %v374_v0, %s1254_s23  ;;  %367 = vrot.lane.b32.xlu1 %v362_v1, %s1254_s23  ;;  %v385_v2 = vld [vmem:[%s292_s14 + $0x1] sm:$0x1]  ;;  %v391_v4 = vld [vmem:[%s310_s26] sm:$0x1]  ;;  %vm379_vm0 = vcmask 131080   ;;  %vm371_vm1 = vcmask 138248  }
  0x7e   : > { %v361_v3 = vld [vmem:[%s292_s14] sm:$0xff]  ;;  %v400_v5 = vld [vmem:[%s292_s14 + $0xe] sm:$0x1]  ;;  %s1255_s21 = smov 126   ;;  %vm421_vm2 = vcmask 7168   ;;  %vm424_vm3 = vcmask 1024  }
  0x7f   : > { %s1256_s27 = smov 2   ;;  %vm441_vm4 = vcmask 146568   ;;  %vm444_vm5 = vcmask 140424   ;;  %vm452_vm6 = vcmask 1045504   ;;  %s1257_s8 = smov 127   ;;  %vm470_vm7 = vcmask 1046528  }
  0x80   : > { %vm519_vm8 = vcmask 1041408   ;;  %s916_s24 = sshll.u32 %s1478_s0, 6  ;;  %vm665_vm13 = vcmask 130048   ;;  %s942_s29 = sshll.u32 %s1239_s18, 10 }
  0x81   : > { %387 = vrot.lane.b32.xlu1 %v385_v2, %s1254_s23  ;;  %365 = vrot.lane.b32.xlu0 %v361_v3, %s1254_s23  ;;  %s1536_s6 = scalar_lea.vmem [#allocation9], %s916_s24  ;;  %s1550_s19 = scalar_lea.vmem [#allocation10], %s916_s24 }
  0x82   : > { %s730_s13 = sshll.u32 %s1550_s19, 4  ;;  %s712_s5 = sshll.u32 %s1536_s6, 4  ;;  %s1596_s13 = int_to_ptr.vmem [resolvable:$true] %s730_s13  ;;  %s1600_s5 = int_to_ptr.vmem [resolvable:$true] %s712_s5 }
  0x83   : > { %s1593_s22 = scalar_lea.hbm %s1693_s4, %s942_s29  ;;  %s1606_s17 = scalar_lea.hbm %s1692_s3, %s942_s29 }
  0x84   : > { %s697_s14 = scalar_lea.sflag [#allocation11], %s1478_s0  ;;  %s1129_s1 = scalar_lea.vmem %s1596_s13, 1024 }
  0x85   : > { %393 = vrot.lane.b32.xlu0 %v391_v4, %s1254_s23  ;;  %402 = vrot.lane.b32.xlu1 %v400_v5, %s1254_s23  ;;  %p1130_p0 = scmp.ne.s32.totalorder %s1596_s13, %s1129_s1  ;;  %p1720_p6 = scmp.ne.s32.totalorder %s1708_s28, 0 }
  0x86   : > { %s1259_s11 = smov [#allocation10]  }
  0x87   : > { %p1131_p12 = pnand %p1130_p0, %p1720_p6  ;;  %s1133_s25 = sshll.u32 %s1259_s11, 4  ;;  %s1134_s25 = int_to_ptr.vmem [resolvable:$false] %s1133_s25 }
  0x88   : > { %s1135_s12 = scalar_lea.vmem %s1134_s25, 2048  ;;  %p1136_p9 = scmp.lt.s32.totalorder %s1596_s13, %s1134_s25 }
  0x89   : > { %p1132_p4 = pneg %p1131_p12  ;;  %p1137_p11 = scmp.lt.s32.totalorder %s1135_s12, %s1129_s1 }
  0x8b   : > { %p1138_p10 = por %p1137_p11, %p1136_p9 }
  0x8d   : > { %p1139_p13 = pnand %p1138_p10, %p1132_p4 }
  0xef   : > { %v377_v6 = vpop.permute.xlu0 %376  ;;  %v368_v7 = vpop.permute.xlu1 %367 }
  0xf0   : > { %380 = vst.msk [vmem:[#allocation2] sm:$0x1] %vm379_vm0, %v377_v6 }
  0xf1   : > { %373 = vst.msk [vmem:[#allocation2 + $0x9] sm:$0xff] %vm371_vm1, %v368_v7 }
  0xf3   : > { %v388_v8 = vpop.permute.xlu1 %387  ;;  %v366_v9 = vpop.permute.xlu0 %365 }
  0xf4   : > { %390 = vst.msk [vmem:[#allocation2] sm:$0x1] %vm379_vm0, %v388_v8 }
  0xf5   : > { %372 = vst.msk [vmem:[#allocation2 + $0x1] sm:$0xff] %vm371_vm1, %v366_v9 }
  0xf7   : > { %v394_v10 = vpop.permute.xlu0 %393  ;;  %v403_v11 = vpop.permute.xlu1 %402 }
  0xf8   : > { %396 = vst.msk [vmem:[#allocation2 + $0x11] sm:$0x1] %vm379_vm0, %v394_v10 }
  0xf9   : > { %405 = vst.msk [vmem:[#allocation2 + $0x11] sm:$0x1] %vm379_vm0, %v403_v11 }
  0xfc   : > { %v407_v12 = vld [vmem:[#allocation2 + $0x8] sm:$0xff]  ;;  %v406_v13 = vld [vmem:[#allocation2] sm:$0xff] }
  0xfd   : > { %414 = vrot.lane.b32.xlu1 %v407_v12, %s1255_s21  ;;  %412 = vrot.lane.b32.xlu0 %v406_v13, %s1255_s21 }
 0x100   : > { %v408_v14 = vld [vmem:[#allocation2 + $0x10] sm:$0x3] }
 0x101   : > { %416 = vrot.lane.b32.xlu0 %v408_v14, %s1255_s21 }
 0x16f   : > { %v415_v15 = vpop.permute.xlu1 %414  ;;  %v413_v16 = vpop.permute.xlu0 %412 }
 0x170   : > { %423 = vst.msk [vmem:[#allocation2 + $0x8] sm:$0xff] %vm421_vm2, %v415_v15  ;;  %422 = vst.msk [vmem:[#allocation2] sm:$0xff] %vm421_vm2, %v413_v16  ;;  %vm668_vm2 = vcmask 130050  }
 0x173   : > { %v417_v17 = vpop.permute.xlu0 %416 }
 0x174   : > { %425 = vst.msk [vmem:[#allocation2 + $0x10] sm:$0x3] %vm424_vm3, %v417_v17 }
 0x177   : > { %v427_v18 = vld [vmem:[#allocation2 + $0x8] sm:$0xff]  ;;  %v426_v19 = vld [vmem:[#allocation2] sm:$0xff] }
 0x178   : > { %434 = vrot.lane.b32.xlu0 %v427_v18, %s1256_s27  ;;  %432 = vrot.lane.b32.xlu1 %v426_v19, %s1256_s27 }
 0x17b   : > { %v428_v20 = vld [vmem:[#allocation2 + $0x10] sm:$0x3] }
 0x17c   : > { %436 = vrot.lane.b32.xlu1 %v428_v20, %s1256_s27 }
 0x1ea   : > { %v433_v21 = vpop.permute.xlu1 %432  ;;  %v435_v22 = vpop.permute.xlu0 %434 }
 0x1eb   : > { %442 = vst.msk [vmem:[#allocation2] sm:$0xff] %vm441_vm4, %v433_v21  ;;  %443 = vst.msk [vmem:[#allocation2 + $0x8] sm:$0xff] %vm441_vm4, %v435_v22 }
 0x1ee   : > { %v437_v23 = vpop.permute.xlu1 %436 }
 0x1ef   : > { %445 = vst.msk [vmem:[#allocation2 + $0x10] sm:$0x3] %vm444_vm5, %v437_v23  ;;  %vm671_vm5 = vcmask 123904  }
 0x1f2   : > { %v446_v24 = vld [vmem:[#allocation2] sm:$0xff]  ;;  %v447_v25 = vld [vmem:[#allocation2 + $0x8] sm:$0xff] }
 0x1f3   : > { %490 = vrot.lane.b32.xlu0 %v446_v24, %s1255_s21  ;;  %492 = vrot.lane.b32.xlu1 %v447_v25, %s1255_s21  ;;  %v453_v26 = vrot.slane %v446_v24, 2  ;;  %v454_v27 = vrot.slane %v447_v25, 2  ;;  %v464_v28 = vmul.f32 10.0, %v446_v24  ;;  %v465_v29 = vmul.f32 10.0, %v447_v25 }
 0x1f5   : > { %v455_v30 = vsel %vm452_vm6, %v453_v26, %v454_v27  ;;  %v471_v35 = vrot.slane %v464_v28, 1  ;;  %v472_v36 = vrot.slane %v465_v29, 1 }
 0x1f6   : > { %v460_v31 = vadd.f32 %v455_v30, %v446_v24  ;;  %v448_v32 = vld [vmem:[#allocation2 + $0x10] sm:$0x3] }
 0x1f7   : > { %505 = vrot.lane.b32.xlu1 %v464_v28, %s1257_s8  ;;  %494 = vrot.lane.b32.xlu0 %v448_v32, %s1255_s21  ;;  %v456_v33 = vrot.slane %v448_v32, 2  ;;  %v466_v34 = vmul.f32 10.0, %v448_v32  ;;  %v473_v41 = vsel %vm470_vm7, %v471_v35, %v472_v36 }
 0x1f8   : > { %v462_v38 = vmul.f32 3.0, %v460_v31 }
 0x1f9   : > { %v474_v37 = vrot.slane %v466_v34, 1  ;;  %v457_v39 = vsel %vm452_vm6, %v454_v27, %v456_v33 }
 0x1fa   : > { %v461_v40 = vadd.f32 %v457_v39, %v447_v25  ;;  %v478_v43 = vadd.f32 %v473_v41, %v462_v38 }
 0x1fb   : > { %509 = vrot.lane.b32.xlu1 %v466_v34, %s1257_s8  ;;  %507 = vrot.lane.b32.xlu0 %v465_v29, %s1257_s8  ;;  %v475_v44 = vsel %vm470_vm7, %v472_v36, %v474_v37 }
 0x1fc   : > { %v463_v42 = vmul.f32 3.0, %v461_v40 }
 0x1fe   : > { %v479_v45 = vadd.f32 %v475_v44, %v463_v42 }
 0x1ff   : > { %482 = vrot.lane.b32.xlu0 %v478_v43, %s1256_s27 }
 0x200   : > { %484 = vrot.lane.b32.xlu1 %v479_v45, %s1256_s27 }
 0x265   : > { %v493_v46 = vpop.permute.xlu1 %492  ;;  %v491_v47 = vpop.permute.xlu0 %490 }
 0x266   : > { %v499_v48 = vadd.f32 %v491_v47, %v446_v24  ;;  %v500_v50 = vadd.f32 %v493_v46, %v447_v25 }
 0x268   : > { %v502_v49 = vmul.f32 3.0, %v499_v48  ;;  %v503_v56 = vmul.f32 3.0, %v500_v50 }
 0x269   : > { %v506_v51 = vpop.permute.xlu1 %505  ;;  %v495_v53 = vpop.permute.xlu0 %494 }
 0x26a   : > { %v514_v52 = vadd.f32 %v506_v51, %v502_v49  ;;  %v501_v54 = vadd.f32 %v495_v53, %v448_v32 }
 0x26c   : > { %v520_v55 = vrot.slane %v514_v52, 6  ;;  %v504_v57 = vmul.f32 3.0, %v501_v54 }
 0x26d   : > { %v510_v58 = vpop.permute.xlu1 %509  ;;  %v508_v59 = vpop.permute.xlu0 %507 }
 0x26e   : > { %v515_v60 = vadd.f32 %v508_v59, %v503_v56  ;;  %v1505_v61 = vsub.f32 %v514_v52, %v520_v55  ;;  %v516_v62 = vadd.f32 %v510_v58, %v504_v57 }
 0x270   : > { %v521_v63 = vrot.slane %v515_v60, 6  ;;  %v566_v3 = vand.u32 2147483647, %v1505_v61  ;;  %v531_v11 = vmul.f32 %v1505_v61, %v1505_v61  ;;  %vm621_vm3 = vcmp.lt.f32.partialorder %v1505_v61, 0.0 }
 0x271   : > { %v483_v19 = vpop.permute.xlu0 %482 }
 0x272   : > { %v522_v0 = vsel %vm519_vm8, %v520_v55, %v521_v63  ;;  %v1508_v1 = vsub.f32 %v516_v62, %v521_v63  ;;  %v572_v10 = vrot.slane %v566_v3, 2  ;;  %v537_v16 = vrot.slane %v531_v11, 2  ;;  %v485_v20 = vpop.permute.xlu1 %484 }
 0x273   : > { %v1510_v2 = vsub.f32 %v515_v60, %v522_v0  ;;  %v488_v21 = vsub.f32 %v478_v43, %v483_v19  ;;  %v489_v22 = vsub.f32 %v479_v45, %v485_v20 }
 0x274   : > { %v568_v4 = vand.u32 2147483647, %v1508_v1  ;;  %v533_v7 = vmul.f32 %v1508_v1, %v1508_v1 }
 0x275   : > { %v567_v5 = vand.u32 2147483647, %v1510_v2  ;;  %v532_v6 = vmul.f32 %v1510_v2, %v1510_v2  ;;  %v564_v23 = vand.u32 2147483647, %v488_v21  ;;  %v565_v24 = vand.u32 2147483647, %v489_v22 }
 0x276   : > { %v575_v8 = vrot.slane %v568_v4, 2  ;;  %v540_v15 = vrot.slane %v533_v7, 2  ;;  %v530_v49 = vmul.f32 %v489_v22, %v489_v22  ;;  %v529_v52 = vmul.f32 %v488_v21, %v488_v21 }
 0x277   : > { %v573_v9 = vrot.slane %v567_v5, 2  ;;  %v538_v14 = vrot.slane %v532_v6, 2  ;;  %vm616_vm11 = vcmp.lt.f32.partialorder %v489_v22, 0.0  ;;  %vm615_vm12 = vcmp.lt.f32.partialorder %v488_v21, 0.0 }
 0x278   : > { %vm622_vm4 = vcmp.lt.f32.partialorder %v1510_v2, 0.0 }
 0x279   : > { %v576_v12 = vsel %vm452_vm6, %v573_v9, %v575_v8  ;;  %v574_v13 = vsel %vm452_vm6, %v572_v10, %v573_v9  ;;  %v541_v17 = vsel %vm452_vm6, %v538_v14, %v540_v15  ;;  %v539_v18 = vsel %vm452_vm6, %v537_v16, %v538_v14 }
 0x27a   : > { %579 = vrot.lane.b32.xlu1 %v576_v12, %s1256_s27  ;;  %577 = vrot.lane.b32.xlu0 %v574_v13, %s1256_s27  ;;  %v1258_v8 = vmov 0.0   ;;  %vm623_vm6 = vcmp.lt.f32.partialorder %v1508_v1, 0.0 }
 0x27b   : > { %918 = vst.msk [vmem:[%s1536_s6 + $0x10] sm:$0xff] %vm665_vm13, %v1258_v8  ;;  %919 = vst.msk [vmem:[%s1536_s6 + $0x18] sm:$0xff] %vm665_vm13, %v1258_v8 }
 0x27c   : > { %922 = vst.msk [vmem:[%s1536_s6 + $0x20] sm:$0xff] %vm665_vm13, %v1258_v8  ;;  %923 = vst.msk [vmem:[%s1536_s6 + $0x28] sm:$0xff] %vm665_vm13, %v1258_v8 }
 0x27d   : > { %926 = vst.msk [vmem:[%s1536_s6 + $0x30] sm:$0xff] %vm665_vm13, %v1258_v8  ;;  %927 = vst.msk [vmem:[%s1536_s6 + $0x38] sm:$0xff] %vm665_vm13, %v1258_v8 }
 0x27e   : > { %544 = vrot.lane.b32.xlu1 %v541_v17, %s1256_s27  ;;  %542 = vrot.lane.b32.xlu0 %v539_v18, %s1256_s27  ;;  %920 = vst.msk [vmem:[%s1550_s19 + $0x10] sm:$0xff] %vm665_vm13, %v1258_v8  ;;  %921 = vst.msk [vmem:[%s1550_s19 + $0x18] sm:$0xff] %vm665_vm13, %v1258_v8 }
 0x27f   : > { %924 = vst.msk [vmem:[%s1550_s19 + $0x20] sm:$0xff] %vm665_vm13, %v1258_v8  ;;  %925 = vst.msk [vmem:[%s1550_s19 + $0x28] sm:$0xff] %vm665_vm13, %v1258_v8 }
 0x280   : > { %928 = vst.msk [vmem:[%s1550_s19 + $0x30] sm:$0xff] %vm665_vm13, %v1258_v8  ;;  %929 = vst.msk [vmem:[%s1550_s19 + $0x38] sm:$0xff] %vm665_vm13, %v1258_v8 }
 0x2ec   : > { %v580_v25 = vpop.permute.xlu1 %579  ;;  %v578_v26 = vpop.permute.xlu0 %577 }
 0x2ed   : > { %v584_v27 = vmax.f32 %v565_v24, %v580_v25  ;;  %v583_v28 = vmax.f32 %v564_v23, %v578_v26  ;;  %v586_v31 = vmin.f32 %v565_v24, %v580_v25  ;;  %v585_v33 = vmin.f32 %v564_v23, %v578_v26 }
 0x2ee   : > { %vm610_vm9 = vcmp.ge.f32.partialorder %v565_v24, %v580_v25  ;;  %vm609_vm10 = vcmp.ge.f32.partialorder %v564_v23, %v578_v26 }
 0x2ef   : > { %v588_v29 = vadd.f32 2.220446e-16, %v584_v27  ;;  %v587_v30 = vadd.f32 2.220446e-16, %v583_v28 }
 0x2f0   : > { %v545_v47 = vpop.permute.xlu1 %544  ;;  %v543_v50 = vpop.permute.xlu0 %542 }
 0x2f1   : > { %1031 = vrcp.f32 %v588_v29  ;;  %v1529_v54 = vadd.f32 %v545_v47, %v530_v49  ;;  %v1531_v56 = vadd.f32 %v543_v50, %v529_v52 }
 0x2f2   : > { %1033 = vrcp.f32 %v587_v30 }
 0x2f3   : > { %1035 = vrsqrt.f32 %v1529_v54  ;;  %vm559_vm14 = vcmp.eq.f32.partialorder %v1529_v54, inf  ;;  %vm552_vm15 = vcmp.eq.f32.partialorder %v1531_v56, inf  ;;  %v562_v20 = vand.u32 2147483648, %v1529_v54 }
 0x2f4   : > { %1037 = vrsqrt.f32 %v1531_v56  ;;  %vm561_vm0 = vcmp.eq.f32.partialorder %v1529_v54, 0.0  ;;  %v555_v22 = vand.u32 2147483648, %v1531_v56  ;;  %vm554_vm1 = vcmp.eq.f32.partialorder %v1531_v56, 0.0 }
 0x2fb   : > { %v1032_v32 = vpop.eup %1031 }
 0x2fc   : > { %v1034_v34 = vpop.eup %1033  ;;  %v592_v35 = vmul.f32 %v1032_v32, %v586_v31 }
 0x2fd   : > { %v591_v36 = vmul.f32 %v1034_v34, %v585_v33  ;;  %v1036_v12 = vpop.eup %1035 }
 0x2fe   : > { %v594_v37 = vmul.f32 %v592_v35, %v592_v35  ;;  %v1038_v13 = vpop.eup %1037  ;;  %v558_v16 = vmul.f32 %v1036_v12, %v1529_v54 }
 0x2ff   : > { %v593_v38 = vmul.f32 %v591_v36, %v591_v36  ;;  %v551_v17 = vmul.f32 %v1038_v13, %v1531_v56 }
 0x300   : > { %v596_v39 = vmul.f32 -0.044326555, %v594_v37  ;;  %v560_v19 = vsel %vm559_vm14, %v1529_v54, %v558_v16 }
 0x301   : > { %v595_v40 = vmul.f32 -0.044326555, %v593_v38  ;;  %v553_v21 = vsel %vm552_vm15, %v1531_v56, %v551_v17  ;;  %v563_v23 = vsel %vm561_vm0, %v562_v20, %v560_v19 }
 0x302   : > { %v598_v41 = vadd.f32 0.15557866, %v596_v39  ;;  %v556_v24 = vsel %vm554_vm1, %v555_v22, %v553_v21 }
 0x303   : > { %v597_v42 = vadd.f32 0.15557866, %v595_v40 }
 0x304   : > { %v600_v43 = vmul.f32 %v598_v41, %v594_v37 }
 0x305   : > { %v599_v44 = vmul.f32 %v597_v42, %v593_v38 }
 0x306   : > { %v602_v45 = vadd.f32 -0.3258084, %v600_v43 }
 0x307   : > { %v601_v46 = vadd.f32 -0.3258084, %v599_v44 }
 0x308   : > { %v604_v48 = vmul.f32 %v602_v45, %v594_v37 }
 0x309   : > { %v603_v51 = vmul.f32 %v601_v46, %v593_v38 }
 0x30a   : > { %v606_v53 = vadd.f32 0.99978787, %v604_v48 }
 0x30b   : > { %v605_v55 = vadd.f32 0.99978787, %v603_v51 }
 0x30c   : > { %v608_v57 = vmul.f32 %v606_v53, %v592_v35 }
 0x30d   : > { %v607_v58 = vmul.f32 %v605_v55, %v591_v36 }
 0x30e   : > { %v612_v59 = vsub.f32 1.5707964, %v608_v57 }
 0x30f   : > { %v611_v60 = vsub.f32 1.5707964, %v607_v58 }
 0x310   : > { %v614_v62 = vsel %vm610_vm9, %v608_v57, %v612_v59 }
 0x311   : > { %v618_v63 = vsub.f32 3.1415927, %v614_v62  ;;  %v613_v0 = vsel %vm609_vm10, %v607_v58, %v611_v60 }
 0x312   : > { %v617_v3 = vsub.f32 3.1415927, %v613_v0 }
 0x313   : > { %v620_v4 = vsel %vm616_vm11, %v618_v63, %v614_v62 }
 0x314   : > { %v619_v5 = vsel %vm615_vm12, %v617_v3, %v613_v0  ;;  %v643_v6 = vrot.slane %v620_v4, 6  ;;  %v625_v10 = vsub.f32 6.2831855, %v620_v4 }
 0x315   : > { %v642_v7 = vrot.slane %v619_v5, 6  ;;  %v624_v9 = vsub.f32 6.2831855, %v619_v5 }
 0x316   : > { %v629_v15 = vrot.slane %v625_v10, 6 }
 0x317   : > { %645 = vrot.lane.b32.xlu1 %v642_v7, %s1255_s21  ;;  %v644_v11 = vsel %vm519_vm8, %v642_v7, %v643_v6  ;;  %v628_v14 = vrot.slane %v624_v9, 6 }
 0x318   : > { %647 = vrot.lane.b32.xlu0 %v644_v11, %s1255_s21 }
 0x319   : > { %v630_v18 = vsel %vm519_vm8, %v628_v14, %v629_v15 }
 0x31b   : > { %649 = vrot.lane.b32.xlu1 %v643_v6, %s1255_s21 }
 0x31c   : > { %631 = vrot.lane.b32.xlu0 %v628_v14, %s1255_s21 }
 0x31f   : > { %633 = vrot.lane.b32.xlu1 %v630_v18, %s1255_s21 }
 0x320   : > { %635 = vrot.lane.b32.xlu0 %v629_v15, %s1255_s21 }
 0x323   : > { %661 = vrot.lane.b32.xlu1 %v563_v23, %s1255_s21 }
 0x324   : > { %659 = vrot.lane.b32.xlu0 %v556_v24, %s1255_s21 }
 0x389   : > { %v646_v25 = vpop.permute.xlu1 %645 }
 0x38a   : > { %v648_v26 = vpop.permute.xlu0 %647 }
 0x38d   : > { %v650_v27 = vpop.permute.xlu1 %649 }
 0x38e   : > { %v632_v28 = vpop.permute.xlu0 %631 }
 0x38f   : > { %v654_v29 = vsel %vm621_vm3, %v632_v28, %v646_v25 }
 0x390   : > { %669 = vst.msk [vmem:[%s1550_s19 - $0x2] sm:$0xfc] %vm668_vm2, %v654_v29 }
 0x391   : > { %v634_v30 = vpop.permute.xlu1 %633 }
 0x392   : > { %v655_v31 = vsel %vm622_vm4, %v634_v30, %v648_v26  ;;  %v636_v61 = vpop.permute.xlu0 %635 }
 0x393   : > { %670 = vst.msk [vmem:[%s1550_s19 + $0x6] sm:$0xff] %vm665_vm13, %v655_v31  ;;  %v656_v2 = vsel %vm623_vm6, %v636_v61, %v650_v27 }
 0x394   : > { %672 = vst.msk [vmem:[%s1550_s19 + $0xe] sm:$0x3] %vm671_vm5, %v656_v2 }
 0x395   : > { %v662_v32 = vpop.permute.xlu1 %661 }
 0x396   : > { %1142 = shalt.err (!%p1139_p13)
}
 0x397   : > { %s1143_s23 = scalar_lea.hbm %s1593_s22, 1024  ;;  %s1147_s27 = scalar_lea.hbm %s1693_s4, 2048 }
 0x398   : > { %p1144_p8 = scmp.ne.s32.totalorder %s1593_s22, %s1143_s23  ;;  %p1148_p5 = scmp.lt.u32.totalorder %s1593_s22, %s1693_s4 }
 0x399   : > { %p1149_p1 = scmp.lt.u32.totalorder %s1147_s27, %s1143_s23  ;;  %p1151_p0 = scmp.lt.u32.totalorder %s1143_s23, %s1593_s22 }
 0x39a   : > { %p1145_p7 = pnand %p1144_p8, %p1720_p6 }
 0x39b   : > { %p1150_p2 = por %p1149_p1, %p1148_p5 }
 0x39c   : > { %p1146_p3 = pneg %p1145_p7 }
 0x39d   : > { %p1152_p12 = por %p1151_p0, %p1150_p2 }
 0x39f   : > { %p1153_p4 = pnand %p1152_p12, %p1146_p3 }
 0x3a1   : > { %1156 = shalt.err (!%p1153_p4)
}
 0x3a2   : > { %s1260_s19 = smov 128   ;;  %s1261_s29 = smov 8   ;;  %667 = vst.msk [vmem:[%s1536_s6 + $0x8] sm:$0xff] %vm665_vm13, %v662_v32  ;;  %v660_v1 = vpop.permute.xlu0 %659 }
 0x3a3   : > { %952 = dma.vmem_to_hbm [thread:$0]  (%p1720_p6), %s1596_s13, 1024, %s1593_s22, %s697_s14, %s1260_s19, %s1260_s19, %s1261_s29  }
 0x3a4   : > { %666 = vst.msk [vmem:[%s1536_s6] sm:$0xff] %vm665_vm13, %v660_v1  ;;  %s692_s10 = scalar_lea.sflag [#allocation5], %s1478_s0  ;;  %s1157_s7 = scalar_lea.vmem %s1600_s5, 1024 }
 0x3a5   : > { %p1158_p9 = scmp.ne.s32.totalorder %s1600_s5, %s1157_s7  ;;  %s1262_s18 = smov [#allocation9]  }
 0x3a6   : > { %s1161_s9 = sshll.u32 %s1262_s18, 4  ;;  %s1162_s9 = int_to_ptr.vmem [resolvable:$false] %s1161_s9 }
 0x3a7   : > { %p1159_p11 = pnand %p1158_p9, %p1720_p6  ;;  %s1163_s1 = scalar_lea.vmem %s1162_s9, 2048 }
 0x3a8   : > { %p1164_p13 = scmp.lt.s32.totalorder %s1600_s5, %s1162_s9  ;;  %p1165_p8 = scmp.lt.s32.totalorder %s1163_s1, %s1157_s7 }
 0x3a9   : > { %p1160_p10 = pneg %p1159_p11 }
 0x3aa   : > { %p1166_p7 = por %p1165_p8, %p1164_p13 }
 0x3ac   : > { %p1167_p3 = pnand %p1166_p7, %p1160_p10 }
 0x3ae   : > { %1170 = shalt.err (!%p1167_p3)
}
 0x3af   : > { %s1171_s6 = scalar_lea.hbm %s1606_s17, 1024  ;;  %s1175_s14 = scalar_lea.hbm %s1692_s3, 2048 }
 0x3b0   : > { %p1172_p5 = scmp.ne.s32.totalorder %s1606_s17, %s1171_s6  ;;  %p1176_p0 = scmp.lt.u32.totalorder %s1606_s17, %s1692_s3 }
 0x3b1   : > { %p1177_p12 = scmp.lt.u32.totalorder %s1175_s14, %s1171_s6  ;;  %p1179_p9 = scmp.lt.u32.totalorder %s1171_s6, %s1606_s17 }
 0x3b2   : > { %p1173_p1 = pnand %p1172_p5, %p1720_p6 }
 0x3b3   : > { %p1178_p4 = por %p1177_p12, %p1176_p0 }
 0x3b4   : > { %p1174_p2 = pneg %p1173_p1 }
 0x3b5   : > { %p1180_p11 = por %p1179_p9, %p1178_p4 }
 0x3b7   : > { %p1181_p10 = pnand %p1180_p11, %p1174_p2 }
 0x3b9   : > { %1184 = shalt.err (!%p1181_p10)
}
 0x3ba   : > { %951 = dma.vmem_to_hbm [thread:$0]  (%p1720_p6), %s1600_s5, 1024, %s1606_s17, %s692_s10, %s1260_s19, %s1260_s19, %s1261_s29  }
 0x3bb PF: > { %s745_s12 = sand.u32 1, %s1227_s15   ;;  %p1721_p13 = scmp.ne.s32.totalorder %s1710_s30, 0 }
 0x3bc   : > { %p1722_p8 = scmp.ge.s32.totalorder %s1247_s20, 2  ;;  %s746_s23 = scalar_lea.sflag [#allocation5], %s745_s12 }
 0x3be   : > { %p966_p7 = pnand %p1722_p8, %p1721_p13 }
 0x3c0   : > { %1218 = dma.done.wait (!%p966_p7), %s746_s23, 1024  }
 0x3c1   : > { %1220 = vsyncadd (!%p966_p7), %s746_s23, 4294966272  ;;  %s755_s28 = scalar_lea.sflag [#allocation11], %s745_s12 }
 0x3c2   : > { %1222 = dma.done.wait (!%p966_p7), %s755_s28, 1024  }
 0x3c3   : > { %1224 = vsyncadd (!%p966_p7), %s755_s28, 4294966272  ;;  %s27_s20 = sadd.s32 1, %s1247_s20   ;;  %s1723_s0 = sld [smem:[#allocation16_spill]] }
 0x3c4   : > { %p24_p3 = scmp.ge.s32.totalorder %s27_s20, 4   ;;  %s1724_s17 = sld [smem:[#allocation19_spill]] }
 0x3c5   : > { %s1725_s18 = sld [smem:[#allocation17_spill]]  ;;  %s1726_s19 = sld [smem:[#allocation18_spill]] }
 0x3c6   : > { %s1727_s15 = smov %s1231_s16  ;;  %26 = sbr.rel (!%p24_p3) target bundleno = 13 (0xd), region = 132 }
 0x3c9   : > { %s1728_s16 = smov %s1723_s0 }
 0x3cd   :  { %760 = vsyncpa [#allocation4], 1 }
 0x3ce   :  { %762 = vsyncpa [#allocation4 + $0x1], 1 }
 0x3cf   :  { %763 = vsyncpa [#allocation7], 1 }
 0x3d0   :  { %765 = vsyncpa [#allocation7 + $0x1], 1 }
 0x3d1   :  { %766 = vsyncpa [#allocation5], 1 }
 0x3d2   :  { %768 = vsyncpa [#allocation5 + $0x1], 1 }
 0x3d3   :  { %769 = vsyncpa [#allocation11], 1 }
 0x3d4   :  { %771 = vsyncpa [#allocation11 + $0x1], 1 }

</bundles_post_ra>
